<compile_context>
chip_gen: v6e
topology: v6e:2x2x1
jax: 0.10.0
libtpu: 0.0.40
codegen_flags: <defaults>
</compile_context>

<pallas_src>
import functools

import jax
import jax.numpy as jnp
from jax.experimental import pallas as pl
from jax.experimental.pallas import tpu as pltpu

LANES = 128            # vreg lane width (last dim of every block)
SUBLANES = 8           # f32 sublane granularity
MAX_TILE_ROWS = 2048   # (2048,128) f32 = 1 MiB per block per input


def _prod(shape):
    p = 1
    for d in shape:
        p *= int(d)
    return p


def _round_up(a, b):
    return ((a + b - 1) // b) * b


def _leading_rep_split(x_shape, t_shape):
    """If broadcasting x -> t flattens to a contiguous tiling of x.ravel(),
    return (n_rep, inner) with inner == x.size and t.size == n_rep * inner.
    Otherwise (interleaved repeat / not broadcastable) return None."""
    nx, nt = len(x_shape), len(t_shape)
    if nx > nt:
        return None
    off = nt - nx
    seen_bcast = False
    for i in range(nt - 1, -1, -1):
        td = int(t_shape[i])
        xd = int(x_shape[i - off]) if i >= off else 1
        if xd == td:
            if seen_bcast and td != 1:
                return None  # matching non-trivial dim left of a broadcast dim
            continue
        if xd == 1:
            seen_bcast = True
            continue
        return None          # not broadcastable
    inner = _prod(x_shape)
    total = _prod(t_shape)
    if inner == 0 or total % inner != 0:
        return None
    return total // inner, inner


def _mse_kernel(x_ref, t_ref, loss_ref, acc_ref, *, inv_n):
    """Accumulate (x - t)^2 into a VMEM vector accumulator; reduce once at end."""
    r = pl.program_id(0)    # broadcast-repeat axis
    i = pl.program_id(1)    # row-tile axis
    first = jnp.logical_and(r == 0, i == 0)
    last = jnp.logical_and(r == pl.num_programs(0) - 1,
                           i == pl.num_programs(1) - 1)

    @pl.when(first)
    def _():
        acc_ref[...] = jnp.zeros_like(acc_ref)
        loss_ref[0, 0] = jnp.float32(0.0)

    d = x_ref[...].astype(jnp.float32) - t_ref[...].astype(jnp.float32)
    acc_ref[...] += d * d   # pure VPU work each step; DMAs stream underneath

    @pl.when(last)
    def _():
        loss_ref[0, 0] = jnp.sum(acc_ref[...]) * jnp.float32(inv_n)


def _mse_loss_pallas(x, target, n_rep, inner):
    """MSE between tile(x.ravel(), n_rep) and target.ravel() (scalar f32).

    x has `inner` elements; target has n_rep * inner elements.  The broadcast
    repetition is expressed via the grid/index_map, so the expanded input is
    never written to HBM.
    """
    total_true = n_rep * inner

    rows = -(-inner // LANES)                    # cdiv(inner, 128)
    if rows <= MAX_TILE_ROWS:
        row_tile = _round_up(rows, SUBLANES)     # one block covers the whole slab
    else:
        row_tile = MAX_TILE_ROWS
    rows_p = _round_up(rows, row_tile)
    inner_p = rows_p * LANES

    x_flat = x.reshape(inner)
    t_flat = target.reshape(n_rep, inner)
    if inner_p != inner:
        # Zero-pad BOTH operands identically: padded lanes contribute
        # (0 - 0)^2 == 0; inv_n stays based on the true element count.
        # TODO(synk): a masked final block would avoid this extra copy.
        x_flat = jnp.pad(x_flat, (0, inner_p - inner))
        t_flat = jnp.pad(t_flat, ((0, 0), (0, inner_p - inner)))

    x2d = x_flat.reshape(rows_p, LANES)
    t2d = t_flat.reshape(n_rep * rows_p, LANES)

    row_blocks = rows_p // row_tile
    grid = (n_rep, row_blocks)
    kernel = functools.partial(_mse_kernel, inv_n=1.0 / float(total_true))

    loss = pl.pallas_call(
        kernel,
        out_shape=jax.ShapeDtypeStruct((1, 1), jnp.float32),
        grid_spec=pltpu.PrefetchScalarGridSpec(
            num_scalar_prefetch=0,
            grid=grid,
            in_specs=[
                # x: index_map ignores the repeat axis -> re-read from its
                # small original HBM buffer instead of a materialized expand.
                pl.BlockSpec((row_tile, LANES), lambda r, i: (i, 0)),
                # target: walk repeats x row-tiles.
                pl.BlockSpec((row_tile, LANES),
                             lambda r, i: (r * row_blocks + i, 0)),
            ],
            out_specs=pl.BlockSpec(memory_space=pltpu.SMEM),
            scratch_shapes=[pltpu.VMEM((row_tile, LANES), jnp.float32)],
        ),
        compiler_params=pltpu.CompilerParams(
            dimension_semantics=("arbitrary", "arbitrary"),  # both reduce axes
        ),
        # TODO(synk): on v7x, split the row axis across the two TensorCores
        # (leading "parallel" axis + per-core partial sums summed in JAX).
    )(x2d, t2d)
    return loss[0, 0]


class ContentLoss:
    """JAX/Pallas port of the PyTorch ContentLoss module (forward pass)."""

    def __init__(self, target):
        # target.detach() -> constant, no gradient flow into it
        self.target = jax.lax.stop_gradient(jnp.asarray(target))
        self.loss = None

    def __call__(self, x):
        tgt = self.target
        split = _leading_rep_split(x.shape, tgt.shape)
        if split is not None:
            n_rep, inner = split
            x_use = x
        else:
            # General (non-leading) broadcast: materialize for correctness.
            x_use = jnp.broadcast_to(x, tgt.shape)
            n_rep, inner = 1, _prod(tgt.shape)
        # TODO(synk): wrap in jax.custom_vjp if gradients of self.loss w.r.t. x
        # are needed (bwd is 2*(x - t)/N summed over the broadcast dims).
        self.loss = _mse_loss_pallas(x_use, tgt, n_rep, inner)
        # Module returns its input unchanged.
        return x


if __name__ == "__main__":
    key = jax.random.PRNGKey(0)
    k_t, k_x, k_t2, k_x2 = jax.random.split(key, 4)

    # Case 1: leading-broadcast input (the PyTorch .expand() case).
    target = jax.random.normal(k_t, (2, 4, 16, 16), dtype=jnp.float32)
    x = jax.random.normal(k_x, (1, 4, 16, 16), dtype=jnp.float32)
    module = ContentLoss(target)
    out = jax.block_until_ready(module(x))
    loss = jax.block_until_ready(module.loss)
    ref = jnp.mean((jnp.broadcast_to(x, target.shape) - target) ** 2)
    assert out.shape == x.shape
    assert jnp.allclose(loss, ref, rtol=1e-5, atol=1e-6), (loss, ref)

    # Case 2: non-128-aligned inner size + broadcast (exercises the zero-pad path).
    target2 = jax.random.normal(k_t2, (2, 3, 10, 10), dtype=jnp.float32)
    x2 = jax.random.normal(k_x2, (1, 3, 10, 10), dtype=jnp.float32)
    module2 = ContentLoss(target2)
    out2 = jax.block_until_ready(module2(x2))
    loss2 = jax.block_until_ready(module2.loss)
    ref2 = jnp.mean((jnp.broadcast_to(x2, target2.shape) - target2) ** 2)
    assert out2.shape == x2.shape
    assert jnp.allclose(loss2, ref2, rtol=1e-5, atol=1e-6), (loss2, ref2)

    print("KERNEL_OK")
</pallas_src>

<mosaic_0001>
module attributes {stable_mosaic.version = 11 : i64} {
  func.func @_mse_kernel(%arg0: i32, %arg1: i32, %arg2: memref<8x128xf32, #tpu.memory_space<vmem>>, %arg3: memref<8x128xf32, #tpu.memory_space<vmem>>, %arg4: memref<1x1xf32, #tpu.memory_space<smem>>, %arg5: memref<8x128xf32, #tpu.memory_space<vmem>>) attributes {dimension_semantics = [#tpu.dimension_semantics<arbitrary>, #tpu.dimension_semantics<arbitrary>], iteration_bounds = array<i64: 2, 1>, scalar_prefetch = 0 : i64, scratch_operands = 1 : i64, tpu.core_type = #tpu.core_type<tc>, window_params = [{transform_indices = @transform_0, window_bounds = array<i64: 8, 128>}, {transform_indices = @transform_1, window_bounds = array<i64: 8, 128>}, {transform_indices = @transform_2, window_bounds = array<i64: 1, 1>}]} {
    %c0_i32 = arith.constant 0 : i32
    %0 = arith.cmpi eq, %arg0, %c0_i32 : i32
    %c0_i32_0 = arith.constant 0 : i32
    %1 = arith.cmpi eq, %arg1, %c0_i32_0 : i32
    %2 = arith.andi %0, %1 : i1
    %c1_i32 = arith.constant 1 : i32
    %3 = arith.cmpi eq, %arg0, %c1_i32 : i32
    %c0_i32_1 = arith.constant 0 : i32
    %4 = arith.cmpi eq, %arg1, %c0_i32_1 : i32
    %5 = arith.andi %3, %4 : i1
    %6 = arith.extui %2 : i1 to i32
    %c0_i32_2 = arith.constant 0 : i32
    %7 = arith.cmpi ne, %6, %c0_i32_2 : i32
    scf.if %7 {
      %cst = arith.constant 0.000000e+00 : f32
      %17 = vector.broadcast %cst : f32 to vector<8x128xf32>
      %c0_11 = arith.constant 0 : index
      %c0_12 = arith.constant 0 : index
      %18 = vector.load %arg5[%c0_11, %c0_12] : memref<8x128xf32, #tpu.memory_space<vmem>>, vector<8x128xf32>
      tpu.vector_store %arg5[%c0_11, %c0_12], %17 {strides = array<i32>} : memref<8x128xf32, #tpu.memory_space<vmem>>, vector<8x128xf32>,
      %cst_13 = arith.constant 0.000000e+00 : f32
      %c0_14 = arith.constant 0 : index
      %c0_15 = arith.constant 0 : index
      %19 = memref.load %arg4[%c0_14, %c0_15] : memref<1x1xf32, #tpu.memory_space<smem>>
      memref.store %cst_13, %arg4[%c0_14, %c0_15] : memref<1x1xf32, #tpu.memory_space<smem>>
    } else {
    }
    %c0 = arith.constant 0 : index
    %c0_3 = arith.constant 0 : index
    %8 = vector.load %arg2[%c0, %c0_3] : memref<8x128xf32, #tpu.memory_space<vmem>>, vector<8x128xf32>
    %c0_4 = arith.constant 0 : index
    %c0_5 = arith.constant 0 : index
    %9 = vector.load %arg3[%c0_4, %c0_5] : memref<8x128xf32, #tpu.memory_space<vmem>>, vector<8x128xf32>
    %10 = arith.subf %8, %9 : vector<8x128xf32>
    %c0_6 = arith.constant 0 : index
    %c0_7 = arith.constant 0 : index
    %11 = vector.load %arg5[%c0_6, %c0_7] : memref<8x128xf32, #tpu.memory_space<vmem>>, vector<8x128xf32>
    %12 = arith.mulf %10, %10 : vector<8x128xf32>
    %13 = arith.addf %11, %12 : vector<8x128xf32>
    %c0_8 = arith.constant 0 : index
    %c0_9 = arith.constant 0 : index
    %14 = vector.load %arg5[%c0_8, %c0_9] : memref<8x128xf32, #tpu.memory_space<vmem>>, vector<8x128xf32>
    tpu.vector_store %arg5[%c0_8, %c0_9], %13 {strides = array<i32>} : memref<8x128xf32, #tpu.memory_space<vmem>>, vector<8x128xf32>,
    %15 = arith.extui %5 : i1 to i32
    %c0_i32_10 = arith.constant 0 : i32
    %16 = arith.cmpi ne, %15, %c0_i32_10 : i32
    scf.if %16 {
      %c0_11 = arith.constant 0 : index
      %c0_12 = arith.constant 0 : index
      %17 = vector.load %arg5[%c0_11, %c0_12] : memref<8x128xf32, #tpu.memory_space<vmem>>, vector<8x128xf32>
      %18 = vector.shape_cast %17 : vector<8x128xf32> to vector<1x8x128xf32>
      %cst = arith.constant dense<0.000000e+00> : vector<1xf32>
      %19 = vector.multi_reduction <add>, %18, %cst [1, 2] : vector<1x8x128xf32> to vector<1xf32>
      %20 = vector.shape_cast %19 : vector<1xf32> to vector<1x1x1xf32>
      %21 = vector.extract %20[0, 0, 0] : f32 from vector<1x1x1xf32>
      %cst_13 = arith.constant 4.8828125E-4 : f32
      %22 = arith.mulf %21, %cst_13 : f32
      %c0_14 = arith.constant 0 : index
      %c0_15 = arith.constant 0 : index
      %23 = memref.load %arg4[%c0_14, %c0_15] : memref<1x1xf32, #tpu.memory_space<smem>>
      memref.store %22, %arg4[%c0_14, %c0_15] : memref<1x1xf32, #tpu.memory_space<smem>>
    } else {
    }
    return
  }
  func.func @transform_0(%arg0: i32, %arg1: i32) -> (i32, i32) {
    %c0_i32 = arith.constant 0 : i32
    %c0_i32_0 = arith.constant 0 : i32
    return %arg1, %c0_i32 : i32, i32
  }
  func.func @transform_1(%arg0: i32, %arg1: i32) -> (i32, i32) {
    %c1_i32 = arith.constant 1 : i32
    %0 = arith.muli %arg0, %c1_i32 : i32
    %1 = arith.addi %0, %arg1 : i32
    %c0_i32 = arith.constant 0 : i32
    %c0_i32_0 = arith.constant 0 : i32
    return %1, %c0_i32 : i32, i32
  }
  func.func @transform_2(%arg0: i32, %arg1: i32) -> (i32, i32) {
    %c0_i32 = arith.constant 0 : i32
    %c0_i32_0 = arith.constant 0 : i32
    %c0_i32_1 = arith.constant 0 : i32
    return %c0_i32, %c0_i32_0 : i32, i32
  }
}

</mosaic_0001>

<bundles_post_ra>
// kernel: tpu_custom_call.1
= control target key start
LH: loop header
LB: loop body
LE: loop exit
PB: predicated region body
PF: predicated region fallthrough
CT: control target
= control target key end

     0   :  { %7 = vsyncpa [#allocation4], 0  ;;  %s662_s0 = inlined_call_operand.hbm [shape: f32[8,128], index: 0, kind: input, shape index: {}]   ;;  %s663_s1 = inlined_call_operand.hbm [shape: f32[16,128], index: 1, kind: input, shape index: {}]   ;;  %s664_s2 = inlined_call_operand.hbm [shape: f32[1,1], index: 2, kind: output, shape index: {}]  }
   0x1   :  { %8 = vsyncpa [#allocation7], 0 }
   0x2   :  { %10 = vsyncpa [#allocation7 + $0x1], 0 }
   0x3   :  { %11 = vsyncpa [#allocation5], 0  ;;  %s535_s9 = smov 0   ;;  %s537_s10 = smov 0  }
   0x4   :  { %s539_s11 = smov 0   ;;  %s541_s12 = smov 0  }
   0x5   :  { %s543_s13 = smov 0   ;;  %s545_s14 = smov 0  }
   0x6 LB: > { %s297_s15 = sadd.s32 4294967295, %s513_s14   ;;  %p77_p0 = scmp.ne.s32.totalorder %s497_s10, %s493_s9  ;;  %s513_s14 = sphi %s545_s14, %s17_s14   ;;  %s509_s13 = sphi %s543_s13, %s674_s13   ;;  %s505_s12 = sphi %s541_s12, %s673_s12   ;;  %s501_s11 = sphi %s539_s11, %s672_s11   ;;  %s497_s10 = sphi %s537_s10, %s671_s10   ;;  %s493_s9 = sphi %s535_s9, %s670_s9  }
   0x7   : > { %p567_p1 = scmp.eq.s32.totalorder %s297_s15, 0  ;;  %p298_p2 = scmp.ge.s32.totalorder %s513_s14, 1 }
   0x8   : > { %p109_p3 = scmp.lt.s32.totalorder %s513_s14, 3  ;;  %s515_s19 = smov [#allocation3]  }
   0x9   : > { %p575_p4 = por %p567_p1, %p77_p0  ;;  %s124_s20 = sshll.u32 %s515_s19, 4  ;;  %s125_s20 = int_to_ptr.vmem [resolvable:$true] %s124_s20 }
   0xa   : > { %p579_p5 = pnand %p298_p2, %p109_p3  ;;  %s29_s22 = sadd.s32 1, %s509_s13 }
   0xb   : > { %s64_s23 = sadd.s32 1, %s501_s11  ;;  %p31_p8 = scmp.ge.s32.totalorder %s29_s22, 2 }
   0xc   : > { %p326_p6 = pneg %p579_p5  ;;  %s402_s24 = scalar_lea.vmem %s125_s20, 128 }
   0xd   : > { %p403_p10 = scmp.ne.s32.totalorder %s125_s20, %s402_s24  ;;  %p410_p13 = scmp.lt.s32.totalorder %s125_s20, %s125_s20 }
   0xe   : > { %p587_p7 = pnand %p326_p6, %p567_p1  ;;  %p411_p0 = scmp.lt.s32.totalorder %s402_s24, %s402_s24 }
  0x10   : > { %p393_p9 = pneg %p587_p7  ;;  %p412_p2 = por %p411_p0, %p410_p13 }
  0x12   : > { %p405_p11 = pnand %p403_p10, %p393_p9 }
  0x14   : > { %p406_p12 = pneg %p405_p11 }
  0x16   : > { %p413_p3 = pnand %p412_p2, %p406_p12 }
  0x18   : > { %416 = shalt.err (!%p413_p3)
}
  0x19   : > { %329 = dma.hbm_to_vmem [thread:$0]  (!%p587_p7), %s662_s0, 128, %s125_s20, [#allocation4]  }
  0x1a   : > { %s676_s22 = smov (%p31_p8, %s29_s22), 0  ;;  %p71_p6 = scmp.ne.s32.totalorder %s501_s11, %s497_s10 }
  0x1b   : > { %p72_p9 = scmp.eq.s32.totalorder %s513_s14, 0  ;;  %s61_s27 = ssub.s32 %s509_s13, %s676_s22 }
  0x1c   : > { %p335_p10 = scmp.lt.s32.totalorder %s513_s14, 2  ;;  %p62_p11 = scmp.eq.s32.totalorder %s61_s27, 0 }
  0x1d   : > { %p73_p12 = por %p72_p9, %p71_p6  ;;  %s135_s28 = sand.u32 1, %s501_s11  }
  0x1e   : > { %s302_s29 = sshll.u32 %s509_s13, 7  ;;  %s301_s3 = sshll.u32 %s135_s28, 3 }
  0x1f   : > { %s611_s30 = scalar_select %p62_p11, %s501_s11, %s64_s23  }
  0x20   : > { %s145_s6 = scalar_lea.hbm %s663_s1, %s302_s29  ;;  %s139_s7 = scalar_lea.vmem [#allocation6], %s301_s3 }
  0x21   : > { %s147_s8 = sshll.u32 %s139_s7, 4  ;;  %p616_p7 = pnand %p335_p10, %p73_p12  ;;  %s148_s8 = int_to_ptr.vmem [resolvable:$true] %s147_s8 }
  0x22   : > { %s136_s19 = scalar_lea.sflag [#allocation7], %s135_s28  ;;  %s430_s20 = scalar_lea.vmem %s148_s8, 128 }
  0x23   : > { %p419_p8 = pneg %p616_p7  ;;  %p431_p13 = scmp.ne.s32.totalorder %s148_s8, %s430_s20 }
  0x24   : > { %s516_s21 = smov [#allocation6]  }
  0x25   : > { %p433_p0 = pnand %p431_p13, %p419_p8  ;;  %s435_s23 = sshll.u32 %s516_s21, 4  ;;  %s436_s23 = int_to_ptr.vmem [resolvable:$false] %s435_s23 }
  0x26   : > { %s437_s24 = scalar_lea.vmem %s436_s23, 256  ;;  %p438_p3 = scmp.lt.s32.totalorder %s148_s8, %s436_s23 }
  0x27   : > { %p434_p2 = pneg %p433_p0  ;;  %p439_p6 = scmp.lt.s32.totalorder %s437_s24, %s430_s20 }
  0x29   : > { %p440_p9 = por %p439_p6, %p438_p3 }
  0x2b   : > { %p441_p10 = pnand %p440_p9, %p434_p2 }
  0x2d   : > { %444 = shalt.err (!%p441_p10)
}
  0x2e   : > { %333 = dma.hbm_to_vmem [thread:$0]  (!%p616_p7), %s145_s6, 128, %s148_s8, %s136_s19  }
  0x2f   : > { %156 = sbr.rel (%p579_p5) target bundleno = 288 (0x120), region = 28 }
  0x34   : > { %480 = dma.done.wait (%p567_p1), [#allocation4], 128  }
  0x35   : > { %482 = vsyncadd (%p567_p1), [#allocation4], 4294967168  ;;  %s162_s25 = sand.u32 1, %s497_s10  }
  0x36   : > { %s305_s26 = sshll.u32 %s162_s25, 3  ;;  %s163_s27 = scalar_lea.sflag [#allocation7], %s162_s25 }
  0x37   : > { %s166_s28 = scalar_lea.vmem [#allocation6], %s305_s26 }
  0x38   : > { %484 = dma.done.wait (%p575_p4), %s163_s27, 128  }
  0x39   : > { %486 = vsyncadd (%p575_p4), %s163_s27, 4294967168  ;;  %p183_p5 = scmp.eq.s32.totalorder %s505_s12, 0  ;;  %p187_p11 = scmp.eq.s32.totalorder %s505_s12, 1 }
  0x3a   : > { %v517_v0 = vmov (%p183_p5), 0.0   ;;  %s518_s16 = smov (%p183_p5), 0.0  }
  0x3b   : > { %191 = sbr.rel (!%p183_p5) target bundleno = 64 (0x40), region = 40  ;;  %192 = vst [vmem:[#allocation2] sm:$0xff] (%p183_p5), %v517_v0  ;;  %194 = sst [smem:[#allocation8]] (%p183_p5), %s518_s16 }
  0x40 PF: > { %v195_v1 = vld [vmem:[#allocation3] sm:$0xff]  ;;  %v196_v2 = vld [vmem:[%s166_s28] sm:$0xff] }
  0x41   : > { %v197_v3 = vsub.f32 %v195_v1, %v196_v2 }
  0x42   : > { %v198_v4 = vld [vmem:[#allocation2] sm:$0xff] }
  0x43   : > { %v199_v5 = vmul.f32 %v197_v3, %v197_v3  ;;  %203 = sbr.rel (!%p187_p11) target bundleno = 282 (0x11a), region = 44 }
  0x45   : > { %v200_v6 = vadd.f32 %v199_v5, %v198_v4 }
  0x47   : > { %201 = vst [vmem:[#allocation2] sm:$0xff] %v200_v6 }
  0x4e   : > { %v204_v7 = vld [vmem:[#allocation2] sm:$0xff] }
  0x4f   : > { %205 = vadd.xlane.f32.xlu0 %v204_v7 }
  0xd8   : > { %v206_v8 = vpop.xlane.xlu0 %205 }
  0xd9   : > { %v207_v9 = vrot.slane %v206_v8, 4 }
  0xdb   : > { %v208_v10 = vadd.f32 %v207_v9, %v206_v8 }
  0xdd   : > { %v209_v11 = vrot.slane %v208_v10, 2 }
  0xdf   : > { %v210_v12 = vadd.f32 %v209_v11, %v208_v10 }
  0xe1   : > { %v211_v13 = vrot.slane %v210_v12, 1 }
  0xe3   : > { %v212_v14 = vadd.f32 %v211_v13, %v210_v12 }
  0xe5   : > { %314 = vpush %v212_v14 }
 0x116   : > { %s315_s17 = spop %314 }
 0x117   : > { %s214_s18 = smul.f32 0.00048828125, %s315_s17 }
 0x119   : > { %216 = sst [smem:[#allocation8]] %s214_s18 }
 0x11a PF: > { %p337_p1 = scmp.eq.s32.totalorder %s297_s15, 1  ;;  %s519_s29 = smov [#allocation8]  }
 0x11c   : > { %323 = dma.smem_to_hbm (%p337_p1), %s519_s29, 16, %s664_s2, [#allocation5]  }
 0x11d   : > { %488 = dma.done.wait (%p337_p1), [#allocation5], 16  }
 0x11e   : > { %490 = vsyncadd (%p337_p1), [#allocation5], 4294967280 }
 0x11f   : > { %230 = sfence }
 0x120 PF: > { %s17_s14 = sadd.s32 1, %s513_s14   ;;  %s670_s9 = smov %s497_s10 }
 0x121   : > { %p14_p4 = scmp.ge.s32.totalorder %s17_s14, 4   ;;  %s671_s10 = smov %s501_s11 }
 0x122   : > { %s672_s11 = smov %s611_s30  ;;  %s673_s12 = smov %s509_s13 }
 0x123   : > { %s674_s13 = smov %s676_s22  ;;  %16 = sbr.rel (!%p14_p4) target bundleno = 6 (0x6), region = 81 }
 0x128   :  { %236 = vsyncpa [#allocation4], 1 }
 0x129   :  { %238 = vsyncpa [#allocation4 + $0x1], 1 }
 0x12a   :  { %239 = vsyncpa [#allocation7], 1 }
 0x12b   :  { %241 = vsyncpa [#allocation7 + $0x1], 1 }
 0x12c   :  { %242 = vsyncpa [#allocation5], 1 }
 0x12d   :  { %244 = vsyncpa [#allocation5 + $0x1], 1 }

</bundles_post_ra>
